<compile_context>
chip_gen: v5e
topology: v5e:2x2
jax: 0.10.0
libtpu: 0.0.40
codegen_flags: <defaults>
</compile_context>

<pallas_src>
import functools

import jax
import jax.numpy as jnp
from jax.experimental import pallas as pl
from jax.experimental.pallas import tpu as pltpu


def _length_maxpool_kernel(x_ref, w_ref, b_ref, o_ref, acc_ref, *, l_total, mask_tail):
    # x_ref:   (tile_b, l_chunk, D_in)   stored dtype (cast to compute dtype here)
    # w_ref:   (D_in, D_out_p)           compute dtype (bf16)
    # b_ref:   (1, D_out_p)              f32
    # o_ref:   (tile_b, D_out_p)         output dtype
    # acc_ref: (tile_b, D_out_p)         f32 running max over L chunks
    j = pl.program_id(1)

    @pl.when(j == 0)
    def _init():
        acc_ref[...] = jnp.full_like(acc_ref, -jnp.inf)

    tb, lc, d_in = x_ref.shape
    d_out = w_ref.shape[1]

    # One MXU matmul over all tile_b*l_chunk rows, f32 accumulation.
    x2d = x_ref[...].reshape(tb * lc, d_in).astype(w_ref.dtype)
    h = jnp.dot(x2d, w_ref[...], preferred_element_type=jnp.float32)  # (tb*lc, d_out)
    h3 = h.reshape(tb, lc, d_out)

    if mask_tail:
        # Last L chunk may read past the sequence end; mask those rows to -inf
        # so they cannot win the max.
        row = j * lc + jax.lax.broadcasted_iota(jnp.int32, (1, lc, d_out), 1)
        h3 = jnp.where(row < l_total, h3, -jnp.inf)

    # Per-chunk max over the L axis, folded into the running max.
    acc_ref[...] = jnp.maximum(acc_ref[...], jnp.max(h3, axis=1))

    @pl.when(j == pl.num_programs(1) - 1)
    def _finalize():
        # Bias + relu on the reduced (tile_b, D_out_p) tile only (exact:
        # max/relu monotone, bias constant over L).
        o_ref[...] = jnp.maximum(acc_ref[...] + b_ref[...], 0.0).astype(o_ref.dtype)


def _choose_tiling(B, L, D_in, D_out_p, x_itemsize,
                   target_x_block_bytes, target_h_block_bytes, min_rows):
    """Pick (tile_b, l_chunk) by streamed-byte budget, not MXU rows."""
    # rows = tile_b * l_chunk of the flattened matmul M dimension.
    rows_by_x = max(1, target_x_block_bytes // (D_in * x_itemsize))   # streamed x block
    rows_by_h = max(1, target_h_block_bytes // (D_out_p * 4))         # f32 intermediate
    rows_budget = max(min_rows, min(rows_by_x, rows_by_h))

    if 8 * L <= rows_budget or L <= 8:
        l_chunk = L                                  # whole sequence per step
    else:
        l_chunk = min(L, max(8, (rows_budget // 8) // 8 * 8))   # multiple of 8

    tile_b = max(8, (rows_budget // l_chunk) // 8 * 8)

    # v7x has 2 TensorCores that split only "parallel" grid axes: keep >=2
    # batch steps when B allows.
    if B >= 16:
        tile_b = min(tile_b, max(8, (B // 2) // 8 * 8))
    if tile_b >= B:
        tile_b = B                                   # single tile == full dim (valid block)

    return tile_b, l_chunk, pl.cdiv(B, tile_b), pl.cdiv(L, l_chunk)


def length_max_pool_1d(x, w, b, *, compute_dtype=jnp.bfloat16,
                       target_x_block_bytes=2 << 20,
                       target_h_block_bytes=4 << 20,
                       min_rows=256,
                       vmem_limit_bytes=48 * 1024 * 1024):
    """x: (B, L, D_in); w: (D_in, D_out); b: (D_out,). Returns (B, D_out) in x.dtype."""
    B, L, D_in = x.shape
    assert w.shape[0] == D_in
    D_out = w.shape[1]

    # Lane-pad the output feature dim to a multiple of 128 (dense vst, dense W
    # lanes); padded columns are zero and sliced off afterwards.
    D_out_p = -(-D_out // 128) * 128
    wc = w.astype(compute_dtype)
    bf = b.astype(jnp.float32)
    if D_out_p != D_out:
        wc = jnp.pad(wc, ((0, 0), (0, D_out_p - D_out)))
        bf = jnp.pad(bf, (0, D_out_p - D_out))
    b2 = bf.reshape(1, D_out_p)

    tile_b, l_chunk, num_b, num_l = _choose_tiling(
        B, L, D_in, D_out_p, x.dtype.itemsize,
        target_x_block_bytes, target_h_block_bytes, min_rows)
    mask_tail = (L % l_chunk) != 0

    kernel = functools.partial(_length_maxpool_kernel, l_total=L, mask_tail=mask_tail)

    cost = pl.CostEstimate(
        flops=2 * B * L * D_in * D_out_p,
        transcendentals=0,
        bytes_accessed=(B * L * D_in * x.dtype.itemsize        # x streamed once
                        + D_in * D_out_p * wc.dtype.itemsize   # W (resident)
                        + D_out_p * 4                          # bias
                        + B * D_out_p * x.dtype.itemsize),     # output write
    )

    out_p = pl.pallas_call(
        kernel,
        out_shape=jax.ShapeDtypeStruct((B, D_out_p), x.dtype),
        grid_spec=pltpu.PrefetchScalarGridSpec(
            num_scalar_prefetch=0,
            grid=(num_b, num_l),
            in_specs=[
                pl.BlockSpec((tile_b, l_chunk, D_in), lambda i, j: (i, j, 0)),
                pl.BlockSpec((D_in, D_out_p), lambda i, j: (0, 0)),
                pl.BlockSpec((1, D_out_p), lambda i, j: (0, 0)),
            ],
            out_specs=pl.BlockSpec((tile_b, D_out_p), lambda i, j: (i, 0)),
            scratch_shapes=[pltpu.VMEM((tile_b, D_out_p), jnp.float32)],
        ),
        compiler_params=pltpu.CompilerParams(
            dimension_semantics=("parallel", "arbitrary"),
            vmem_limit_bytes=vmem_limit_bytes,
        ),
        cost_estimate=cost,
    )(x, wc, b2)

    return out_p[:, :D_out] if D_out_p != D_out else out_p


def reference_same_precision(x, w, b, compute_dtype=jnp.bfloat16):
    # Same numerics as the kernel: bf16 operands, f32 accumulation.
    xc = x.astype(compute_dtype)
    wc = w.astype(compute_dtype)
    h = jnp.einsum("bld,dk->blk", xc, wc, preferred_element_type=jnp.float32)
    h = jnp.maximum(h + b.astype(jnp.float32), 0.0)
    return jnp.max(h, axis=1).astype(x.dtype)


def reference_f32(x, w, b):
    # Module semantics in full f32 (loose sanity check for the bf16 path).
    h = jnp.maximum(x @ w + b, 0.0)
    return jnp.max(h, axis=1)


if __name__ == "__main__":
    key = jax.random.PRNGKey(0)

    # --- Case 1: small shapes consistent with the module (batch=2, seq=8, dims=32).
    B, L, D_in, D_out = 2, 8, 32, 32
    kx, kw, kb, key = jax.random.split(key, 4)
    x = jax.random.normal(kx, (B, L, D_in), dtype=jnp.float32)
    bound = 1.0 / (D_in ** 0.5)   # nn.Linear-style init
    w = jax.random.uniform(kw, (D_in, D_out), jnp.float32, -bound, bound)
    b = jax.random.uniform(kb, (D_out,), jnp.float32, -bound, bound)

    out = jax.block_until_ready(length_max_pool_1d(x, w, b))
    assert out.shape == (B, D_out)
    assert jnp.allclose(out, reference_same_precision(x, w, b), atol=2e-3, rtol=2e-3)
    assert jnp.allclose(out, reference_f32(x, w, b), atol=1e-1, rtol=1e-1)

    # --- Case 2: forced tiny tiles to exercise batch tiling, the L-chunk
    # running-max accumulator, and tail-row masking (B % tile_b != 0, L % l_chunk != 0).
    B2, L2 = 20, 20
    kx2, key = jax.random.split(key)
    x2 = jax.random.normal(kx2, (B2, L2, D_in), dtype=jnp.float32)
    out2 = jax.block_until_ready(
        length_max_pool_1d(x2, w, b,
                           target_x_block_bytes=4096,
                           target_h_block_bytes=4096,
                           min_rows=8))
    assert out2.shape == (B2, D_out)
    assert jnp.allclose(out2, reference_same_precision(x2, w, b), atol=2e-3, rtol=2e-3)
    assert jnp.allclose(out2, reference_f32(x2, w, b), atol=1e-1, rtol=1e-1)

    print("KERNEL_OK")
</pallas_src>

<mosaic_0001>
module attributes {stable_mosaic.version = 11 : i64} {
  func.func @_length_maxpool_kernel(%arg0: i32, %arg1: i32, %arg2: memref<2x8x32xf32, #tpu.memory_space<vmem>>, %arg3: memref<32x128xbf16, #tpu.memory_space<vmem>>, %arg4: memref<1x128xf32, #tpu.memory_space<vmem>>, %arg5: memref<2x128xf32, #tpu.memory_space<vmem>>, %arg6: memref<2x128xf32, #tpu.memory_space<vmem>>) attributes {dimension_semantics = [#tpu.dimension_semantics<parallel>, #tpu.dimension_semantics<arbitrary>], iteration_bounds = array<i64: 1, 1>, scalar_prefetch = 0 : i64, scratch_operands = 1 : i64, tpu.core_type = #tpu.core_type<tc>, window_params = [{transform_indices = @transform_0, window_bounds = array<i64: 2, 8, 32>}, {pipeline_mode = #tpu.pipeline_mode<synchronous>, transform_indices = @transform_1, window_bounds = array<i64: 32, 128>}, {pipeline_mode = #tpu.pipeline_mode<synchronous>, transform_indices = @transform_2, window_bounds = array<i64: 1, 128>}, {transform_indices = @transform_3, window_bounds = array<i64: 2, 128>}]} {
    %c0_i32 = arith.constant 0 : i32
    %0 = arith.cmpi eq, %arg1, %c0_i32 : i32
    %1 = arith.extui %0 : i1 to i32
    %c0_i32_0 = arith.constant 0 : i32
    %2 = arith.cmpi ne, %1, %c0_i32_0 : i32
    scf.if %2 {
      %cst_12 = arith.constant 0xFF800000 : f32
      %16 = vector.broadcast %cst_12 : f32 to vector<2x128xf32>
      %c0_13 = arith.constant 0 : index
      %c0_14 = arith.constant 0 : index
      %17 = vector.load %arg6[%c0_13, %c0_14] : memref<2x128xf32, #tpu.memory_space<vmem>>, vector<2x128xf32>
      tpu.vector_store %arg6[%c0_13, %c0_14], %16 {strides = array<i32>} : memref<2x128xf32, #tpu.memory_space<vmem>>, vector<2x128xf32>,
    } else {
    }
    %c0 = arith.constant 0 : index
    %c0_1 = arith.constant 0 : index
    %c0_2 = arith.constant 0 : index
    %3 = vector.load %arg2[%c0, %c0_1, %c0_2] : memref<2x8x32xf32, #tpu.memory_space<vmem>>, vector<2x8x32xf32>
    %4 = vector.shape_cast %3 : vector<2x8x32xf32> to vector<16x32xf32>
    %5 = arith.truncf %4 : vector<16x32xf32> to vector<16x32xbf16>
    %c0_3 = arith.constant 0 : index
    %c0_4 = arith.constant 0 : index
    %6 = vector.load %arg3[%c0_3, %c0_4] : memref<32x128xbf16, #tpu.memory_space<vmem>>, vector<32x128xbf16>
    %cst = arith.constant dense<0.000000e+00> : vector<16x128xf32>
    %7 = tpu.matmul %5, %6, %cst {dimension_numbers = #tpu.dot_dimension_numbers<[1], [0], [0], [1], [0, 0, 1, 1], [], []>} : vector<16x32xbf16>, vector<32x128xbf16>, vector<16x128xf32> -> vector<16x128xf32>
    %8 = vector.shape_cast %7 : vector<16x128xf32> to vector<2x8x128xf32>
    %c0_5 = arith.constant 0 : index
    %c0_6 = arith.constant 0 : index
    %9 = vector.load %arg6[%c0_5, %c0_6] : memref<2x128xf32, #tpu.memory_space<vmem>>, vector<2x128xf32>
    %cst_7 = arith.constant dense<0xFF800000> : vector<2x128xf32>
    %10 = vector.multi_reduction <maximumf>, %8, %cst_7 [1] : vector<2x8x128xf32> to vector<2x128xf32>
    %11 = arith.maximumf %9, %10 : vector<2x128xf32>
    %c0_8 = arith.constant 0 : index
    %c0_9 = arith.constant 0 : index
    %12 = vector.load %arg6[%c0_8, %c0_9] : memref<2x128xf32, #tpu.memory_space<vmem>>, vector<2x128xf32>
    tpu.vector_store %arg6[%c0_8, %c0_9], %11 {strides = array<i32>} : memref<2x128xf32, #tpu.memory_space<vmem>>, vector<2x128xf32>,
    %c0_i32_10 = arith.constant 0 : i32
    %13 = arith.cmpi eq, %arg1, %c0_i32_10 : i32
    %14 = arith.extui %13 : i1 to i32
    %c0_i32_11 = arith.constant 0 : i32
    %15 = arith.cmpi ne, %14, %c0_i32_11 : i32
    scf.if %15 {
      %c0_12 = arith.constant 0 : index
      %c0_13 = arith.constant 0 : index
      %16 = vector.load %arg6[%c0_12, %c0_13] : memref<2x128xf32, #tpu.memory_space<vmem>>, vector<2x128xf32>
      %c0_14 = arith.constant 0 : index
      %c0_15 = arith.constant 0 : index
      %17 = vector.load %arg4[%c0_14, %c0_15] : memref<1x128xf32, #tpu.memory_space<vmem>>, vector<1x128xf32>
      %18 = vector.broadcast %17 : vector<1x128xf32> to vector<2x128xf32>
      %19 = arith.addf %16, %18 : vector<2x128xf32>
      %cst_16 = arith.constant 0.000000e+00 : f32
      %20 = vector.broadcast %cst_16 : f32 to vector<2x128xf32>
      %21 = arith.maximumf %19, %20 : vector<2x128xf32>
      %c0_17 = arith.constant 0 : index
      %c0_18 = arith.constant 0 : index
      %22 = vector.load %arg5[%c0_17, %c0_18] : memref<2x128xf32, #tpu.memory_space<vmem>>, vector<2x128xf32>
      tpu.vector_store %arg5[%c0_17, %c0_18], %21 {strides = array<i32>} : memref<2x128xf32, #tpu.memory_space<vmem>>, vector<2x128xf32>,
    } else {
    }
    return
  }
  func.func @transform_0(%arg0: i32, %arg1: i32) -> (i32, i32, i32) {
    %c0_i32 = arith.constant 0 : i32
    %c0_i32_0 = arith.constant 0 : i32
    return %arg0, %arg1, %c0_i32 : i32, i32, i32
  }
  func.func @transform_1(%arg0: i32, %arg1: i32) -> (i32, i32) {
    %c0_i32 = arith.constant 0 : i32
    %c0_i32_0 = arith.constant 0 : i32
    %c0_i32_1 = arith.constant 0 : i32
    return %c0_i32, %c0_i32_0 : i32, i32
  }
  func.func @transform_2(%arg0: i32, %arg1: i32) -> (i32, i32) {
    %c0_i32 = arith.constant 0 : i32
    %c0_i32_0 = arith.constant 0 : i32
    %c0_i32_1 = arith.constant 0 : i32
    return %c0_i32, %c0_i32_0 : i32, i32
  }
  func.func @transform_3(%arg0: i32, %arg1: i32) -> (i32, i32) {
    %c0_i32 = arith.constant 0 : i32
    %c0_i32_0 = arith.constant 0 : i32
    return %arg0, %c0_i32 : i32, i32
  }
}

</mosaic_0001>

<bundles_post_ra>
// kernel: tpu_custom_call.1
= control target key start
LH: loop header
LB: loop body
LE: loop exit
PB: predicated region body
PF: predicated region fallthrough
CT: control target
= control target key end

     0   :  { %8 = vsyncpa [#allocation4], 0  ;;  %s277_s0 = inlined_call_operand.hbm [shape: f32[2,8,32], index: 0, kind: input, shape index: {}]   ;;  %s278_s1 = inlined_call_operand.hbm [shape: bf16[32,128], index: 1, kind: input, shape index: {}]   ;;  %s279_s2 = inlined_call_operand.vmem [shape: f32[1,128], index: 2, kind: input, shape index: {}]   ;;  %s280_s3 = inlined_call_operand.hbm [shape: f32[2,128], index: 3, kind: output, shape index: {}]  }
   0x1   :  { %9 = vsyncpa [#allocation7], 0 }
   0x2   :  { %10 = vsyncpa [#allocation5], 0  ;;  %s15_s14 = sshll.u32 %s277_s0, 4  ;;  %s237_s15 = smov [#allocation3]   ;;  %s16_s14 = int_to_ptr.hbm [resolvable:$true] %s15_s14 }
   0x3   :  { %s17_s16 = sshll.u32 %s237_s15, 4  ;;  %s28_s19 = sshll.u32 %s278_s1, 4  ;;  %s18_s16 = int_to_ptr.vmem [resolvable:$true] %s17_s16  ;;  %s29_s19 = int_to_ptr.hbm [resolvable:$true] %s28_s19 }
   0x4   :  { %s238_s20 = smov 128   ;;  %s239_s21 = smov 8  }
   0x5   :  { %23 = dma.hbm_to_vmem [thread:$0]  %s16_s14, 256, %s18_s16, [#allocation4], %s238_s20, %s238_s20, %s239_s21  }
   0x6   :  { %s240_s22 = smov [#allocation6]   ;;  %s241_s24 = smov 64  }
   0x7   :  { %s30_s23 = sshll.u32 %s240_s22, 4  ;;  %s242_s25 = smov 4   ;;  %s31_s23 = int_to_ptr.vmem [resolvable:$true] %s30_s23 }
   0x8   :  { %36 = dma.hbm_to_vmem [thread:$0]  %s29_s19, 256, %s31_s23, [#allocation7], %s241_s24, %s241_s24, %s242_s25  }
   0x9   :  { %231 = dma.done.wait [#allocation4], 256  }
   0xa   :  { %232 = vsyncadd [#allocation4], 4294967040 }
   0xb   :  { %233 = dma.done.wait [#allocation7], 256  }
   0xc   :  { %234 = vsyncadd [#allocation7], 4294967040  ;;  %v149_v0 = vld [vmem:[#allocation6 + $0x8] sm:$0xff]  ;;  %v148_v1 = vld [vmem:[#allocation6] sm:$0xff]  ;;  %vm72_vm0 = vcmask 261120   ;;  %v243_v5 = vmov -inf  }
   0xd   :  { %82 = vmatpush.bf16.msra.mxu0 %v149_v0  ;;  %v53_v2 = vld [vmem:[#allocation3] sm:$0xff]  ;;  %v54_v3 = vld [vmem:[#allocation3 + $0x8] sm:$0xff]  ;;  %52 = vst [vmem:[#allocation2] sm:$0x3] %v243_v5  ;;  %vm105_vm1 = vcmask 1041409   ;;  %s244_s26 = smov [#allocation8]  }
   0xe   :  { %v55_v4 = vpack.c.bf16 %v54_v3, %v53_v2  ;;  %v158_v23 = vld [vmem:[%s279_s2] ss:$0 sm:$0xff]  ;;  %s126_s27 = sshll.u32 %s244_s26, 4  ;;  %s128_s30 = sshll.u32 %s280_s3, 4  ;;  %s127_s27 = int_to_ptr.vmem [resolvable:$true] %s126_s27  ;;  %s129_s30 = int_to_ptr.hbm [resolvable:$true] %s128_s30 }
  0x11   :  { %83 = vmatpush.bf16.msra.mxu0 %v148_v1 }
  0x14   :  { %147 = vmatmul.msk.bf16.vlgmr.msra.gmra.mxu0 %vm72_vm0, %v55_v4  ;;  %v90_v19 = vld [vmem:[#allocation2] sm:$0x3] }
  0x91   :  { %v85_v6 = vpop.f32.mrf.mxu0 }
  0x92   :  { %v91_v7 = vrot.slane %v85_v6, 4 }
  0x94   :  { %v92_v8 = vmax.f32 %v85_v6, %v91_v7 }
  0x96   :  { %v93_v9 = vrot.slane %v92_v8, 2 }
  0x98   :  { %v94_v12 = vmax.f32 %v92_v8, %v93_v9 }
  0x99   :  { %v87_v10 = vpop.f32.mrf.mxu0 }
  0x9a   :  { %v97_v11 = vrot.slane %v87_v10, 4  ;;  %v95_v15 = vrot.slane %v94_v12, 1 }
  0x9c   :  { %v98_v13 = vmax.f32 %v87_v10, %v97_v11  ;;  %v96_v18 = vmax.f32 %v94_v12, %v95_v15 }
  0x9e   :  { %v99_v14 = vrot.slane %v98_v13, 2 }
  0xa0   :  { %v100_v16 = vmax.f32 %v98_v13, %v99_v14 }
  0xa2   :  { %v101_v17 = vrot.slane %v100_v16, 1 }
  0xa4   :  { %v102_v20 = vmax.f32 %v100_v16, %v101_v17 }
  0xa6   :  { %v106_v21 = vsel %vm105_vm1, %v102_v20, %v96_v18 }
  0xa7   :  { %v108_v22 = vmax.f32 %v90_v19, %v106_v21 }
  0xa9   :  { %109 = vst [vmem:[#allocation2] sm:$0x3] %v108_v22 }
  0xb0   :  { %v113_v24 = vld [vmem:[#allocation2] sm:$0x3] }
  0xb1   :  { %v118_v25 = vadd.f32 %v158_v23, %v113_v24 }
  0xb3   :  { %v119_v26 = vmax.f32 %v118_v25, 0.0 }
  0xb5   :  { %120 = vst [vmem:[#allocation8] sm:$0x3] %v119_v26 }
  0xb6   :  { %131 = dma.vmem_to_hbm [thread:$0]  %s127_s27, 32, %s129_s30, [#allocation5]  }
  0xb7   :  { %235 = dma.done.wait [#allocation5], 32  }
  0xb8   :  { %236 = vsyncadd [#allocation5], 4294967264 }
  0xb9   :  { %136 = vsyncpa [#allocation4], 1 }
  0xba   :  { %137 = vsyncpa [#allocation7], 1 }
  0xbb   :  { %138 = vsyncpa [#allocation5], 1 }

</bundles_post_ra>
